<compile_context>
chip_gen: v5e
topology: v5e:2x2
jax: 0.10.0
libtpu: 0.0.40
codegen_flags: <defaults>
</compile_context>

<pallas_src>
import jax
import jax.numpy as jnp
from jax.experimental import pallas as pl
from jax.experimental.pallas import tpu as pltpu

_LANES = 512          # lane-dense last dim (multiple of 128)
_TILE_ROWS = 512      # 512 x 512 f32 = 1 MiB per buffer
_TWO_PI = 6.283185307179586


def _round_up(n, m):
    return ((n + m - 1) // m) * m


def _hash32(x):
    """lowbias32 avalanche hash, uint32 -> uint32 (portable VPU ops only)."""
    x = x ^ (x >> 16)
    x = x * jnp.uint32(0x7FEB352D)
    x = x ^ (x >> 15)
    x = x * jnp.uint32(0x846CA68B)
    x = x ^ (x >> 16)
    return x


def _bits_to_unit(bits):
    """uint32 random bits -> uniform float32 in [0, 1) via the mantissa trick."""
    fbits = (bits >> 9) | jnp.uint32(0x3F800000)      # [1, 2)
    return jax.lax.bitcast_convert_type(fbits, jnp.float32) - 1.0


def _noise_kernel(std_ref, seed_ref, x_ref, o_ref):
    """o = x + std * N(0, 1), noise generated on-chip (counter-based PRNG)."""
    tr, lanes = x_ref.shape
    half = lanes // 2
    i = pl.program_id(0)

    std = std_ref[0]

    # Global pair counter: one Box-Muller pair covers element (r, c) in the left
    # half and (r, c + half) in the right half of the padded (rows, 512) slab.
    row = jax.lax.broadcasted_iota(jnp.int32, (tr, half), 0)
    col = jax.lax.broadcasted_iota(jnp.int32, (tr, half), 1)
    pair = (i * tr + row) * half + col                # tile-size invariant

    # Mix the seed in (wrapping int32 arithmetic), two counters per pair.
    soff = seed_ref[0] * jnp.int32(-1640531527) + jnp.int32(0x3C6EF372)
    c0 = jax.lax.bitcast_convert_type(pair * 2 + soff, jnp.uint32)
    c1 = jax.lax.bitcast_convert_type(pair * 2 + 1 + soff, jnp.uint32)

    u1 = 1.0 - _bits_to_unit(_hash32(c0))             # (0, 1]  -> log() finite
    u2 = _bits_to_unit(_hash32(c1))                   # [0, 1)

    # Box-Muller, both branches -> two independent standard normals per pair.
    r = jnp.sqrt(-2.0 * jnp.log(u1))
    theta = jnp.float32(_TWO_PI) * u2
    z0 = r * jnp.cos(theta)
    z1 = r * jnp.sin(theta)

    # std == 0 -> noise is exactly 0 (z0/z1 are always finite), matching torch.
    o_ref[:, :half] = x_ref[:, :half] + (std * z0).astype(o_ref.dtype)
    o_ref[:, half:] = x_ref[:, half:] + (std * z1).astype(o_ref.dtype)


def noise_forward(x, *, max_std, slope_std, iter_count, start_iter,
                  training=True, seed=0):
    """Forward pass of the Noise module. `x` can be any float array (e.g. NCHW)."""
    assert max_std >= 0 and slope_std >= 0 and start_iter >= 0
    iter_count = jnp.asarray(iter_count)
    assert iter_count.size == 1

    if not training:
        return x

    # std schedule, computed on-device (no host sync / recompile per step).
    it = 1.0 + (iter_count.reshape(-1)[0].astype(jnp.float32) - jnp.float32(start_iter))
    std = jnp.where(it > 0.0,
                    jnp.minimum(it * jnp.float32(slope_std / 125000.0),
                                jnp.float32(max_std)),
                    jnp.float32(0.0))
    std_arr = std.reshape(1).astype(jnp.float32)
    seed_arr = jnp.asarray([seed], dtype=jnp.int32)

    orig_shape = x.shape
    total = x.size
    x_flat = x.reshape(-1)

    # Lane-dense slab: (rows, 512). Pad only when total is not a multiple of 512.
    padded_total = _round_up(total, _LANES)
    if padded_total != total:
        x_flat = jnp.pad(x_flat, (0, padded_total - total))
    rows = padded_total // _LANES
    x2 = x_flat.reshape(rows, _LANES)

    # Tile rows: 512 for large tensors (ragged last block handled by Pallas),
    # otherwise the whole (small) slab as a single block.
    tile_rows = _TILE_ROWS if rows >= _TILE_ROWS else rows
    grid = (pl.cdiv(rows, tile_rows),)

    out2 = pl.pallas_call(
        _noise_kernel,
        out_shape=jax.ShapeDtypeStruct((rows, _LANES), x.dtype),
        grid=grid,
        in_specs=[
            pl.BlockSpec(memory_space=pltpu.MemorySpace.SMEM),   # std  scalar
            pl.BlockSpec(memory_space=pltpu.MemorySpace.SMEM),   # seed scalar
            pl.BlockSpec((tile_rows, _LANES), lambda i: (i, 0)), # x tile (VMEM)
        ],
        out_specs=pl.BlockSpec((tile_rows, _LANES), lambda i: (i, 0)),
        compiler_params=pltpu.CompilerParams(
            dimension_semantics=("parallel",)),                  # megacore on v7x
    )(std_arr, seed_arr, x2)

    out_flat = out2.reshape(-1)
    if padded_total != total:
        out_flat = out_flat[:total]
    return out_flat.reshape(orig_shape)

# TODO(synk): backward of NoiseFunction is identity (grad passthrough); only the
# forward pass is implemented here.


if __name__ == "__main__":
    key = jax.random.PRNGKey(0)
    x = jax.random.normal(key, (2, 4, 16, 16), dtype=jnp.float32)

    # Schedule active and clamped at max_std = 0.5.
    iter_count = jnp.array([200000], dtype=jnp.int32)

    y = noise_forward(x, max_std=0.5, slope_std=1.0, iter_count=iter_count,
                      start_iter=1000, training=True, seed=0)
    jax.block_until_ready(y)
    assert y.shape == x.shape and y.dtype == x.dtype

    noise = y - x
    m = float(jnp.mean(noise))
    s = float(jnp.std(noise))
    assert abs(m) < 0.1, f"noise mean off: {m}"
    assert 0.35 < s < 0.65, f"noise std off: {s} (expected ~0.5)"

    # Schedule inactive (it <= 0) -> std = 0 -> exact identity even in training.
    y0 = noise_forward(x, max_std=0.5, slope_std=1.0,
                       iter_count=jnp.array([0], dtype=jnp.int32),
                       start_iter=1000, training=True, seed=0)
    assert jnp.array_equal(y0, x)

    # Eval mode -> identity.
    y_eval = noise_forward(x, max_std=0.5, slope_std=1.0, iter_count=iter_count,
                           start_iter=1000, training=False)
    assert jnp.array_equal(y_eval, x)

    print("KERNEL_OK")
</pallas_src>

<mosaic_0001>
module attributes {stable_mosaic.version = 11 : i64} {
  func.func @_noise_kernel(%arg0: i32, %arg1: memref<1xf32, #tpu.memory_space<smem>>, %arg2: memref<1xi32, #tpu.memory_space<smem>>, %arg3: memref<4x512xf32, #tpu.memory_space<vmem>>, %arg4: memref<4x512xf32, #tpu.memory_space<vmem>>) attributes {dimension_semantics = [#tpu.dimension_semantics<parallel>], iteration_bounds = array<i64: 1>, scalar_prefetch = 0 : i64, scratch_operands = 0 : i64, tpu.core_type = #tpu.core_type<tc>, window_params = [{transform_indices = @transform_0, window_bounds = array<i64: 1>}, {transform_indices = @transform_1, window_bounds = array<i64: 1>}, {transform_indices = @transform_2, window_bounds = array<i64: 4, 512>}, {transform_indices = @transform_3, window_bounds = array<i64: 4, 512>}]} {
    %c0 = arith.constant 0 : index
    %0 = memref.load %arg1[%c0] : memref<1xf32, #tpu.memory_space<smem>>
    %1 = tpu.iota {dimensions = array<i32: 0>} : vector<4x256xi32>
    %2 = tpu.iota {dimensions = array<i32: 1>} : vector<4x256xi32>
    %c4_i32 = arith.constant 4 : i32
    %3 = arith.muli %arg0, %c4_i32 : i32
    %4 = vector.broadcast %3 : i32 to vector<4x256xi32>
    %5 = arith.addi %4, %1 : vector<4x256xi32>
    %c256_i32 = arith.constant 256 : i32
    %6 = vector.broadcast %c256_i32 : i32 to vector<4x256xi32>
    %7 = arith.muli %5, %6 : vector<4x256xi32>
    %8 = arith.addi %7, %2 : vector<4x256xi32>
    %c0_0 = arith.constant 0 : index
    %9 = memref.load %arg2[%c0_0] : memref<1xi32, #tpu.memory_space<smem>>
    %c-1640531527_i32 = arith.constant -1640531527 : i32
    %10 = arith.muli %9, %c-1640531527_i32 : i32
    %c1013904242_i32 = arith.constant 1013904242 : i32
    %11 = arith.addi %10, %c1013904242_i32 : i32
    %c2_i32 = arith.constant 2 : i32
    %12 = vector.broadcast %c2_i32 : i32 to vector<4x256xi32>
    %13 = arith.muli %8, %12 : vector<4x256xi32>
    %14 = vector.broadcast %11 : i32 to vector<4x256xi32>
    %15 = arith.addi %13, %14 : vector<4x256xi32>
    %16 = tpu.bitcast %15 : vector<4x256xi32> -> vector<4x256xi32>
    %c2_i32_1 = arith.constant 2 : i32
    %17 = vector.broadcast %c2_i32_1 : i32 to vector<4x256xi32>
    %18 = arith.muli %8, %17 : vector<4x256xi32>
    %c1_i32 = arith.constant 1 : i32
    %19 = vector.broadcast %c1_i32 : i32 to vector<4x256xi32>
    %20 = arith.addi %18, %19 : vector<4x256xi32>
    %21 = vector.broadcast %11 : i32 to vector<4x256xi32>
    %22 = arith.addi %20, %21 : vector<4x256xi32>
    %23 = tpu.bitcast %22 : vector<4x256xi32> -> vector<4x256xi32>
    %c16_i32 = arith.constant 16 : i32
    %24 = vector.broadcast %c16_i32 : i32 to vector<4x256xi32>
    %25 = arith.shrui %16, %24 : vector<4x256xi32>
    %26 = arith.xori %16, %25 : vector<4x256xi32>
    %c2146121005_i32 = arith.constant 2146121005 : i32
    %27 = vector.broadcast %c2146121005_i32 : i32 to vector<4x256xi32>
    %28 = arith.muli %26, %27 : vector<4x256xi32>
    %c15_i32 = arith.constant 15 : i32
    %29 = vector.broadcast %c15_i32 : i32 to vector<4x256xi32>
    %30 = arith.shrui %28, %29 : vector<4x256xi32>
    %31 = arith.xori %28, %30 : vector<4x256xi32>
    %c-2073254261_i32 = arith.constant -2073254261 : i32
    %32 = vector.broadcast %c-2073254261_i32 : i32 to vector<4x256xi32>
    %33 = arith.muli %31, %32 : vector<4x256xi32>
    %c16_i32_2 = arith.constant 16 : i32
    %34 = vector.broadcast %c16_i32_2 : i32 to vector<4x256xi32>
    %35 = arith.shrui %33, %34 : vector<4x256xi32>
    %36 = arith.xori %33, %35 : vector<4x256xi32>
    %c9_i32 = arith.constant 9 : i32
    %37 = vector.broadcast %c9_i32 : i32 to vector<4x256xi32>
    %38 = arith.shrui %36, %37 : vector<4x256xi32>
    %c1065353216_i32 = arith.constant 1065353216 : i32
    %39 = vector.broadcast %c1065353216_i32 : i32 to vector<4x256xi32>
    %40 = arith.ori %38, %39 : vector<4x256xi32>
    %41 = tpu.bitcast %40 : vector<4x256xi32> -> vector<4x256xf32>
    %cst = arith.constant 1.000000e+00 : f32
    %42 = vector.broadcast %cst : f32 to vector<4x256xf32>
    %43 = arith.subf %41, %42 : vector<4x256xf32>
    %cst_3 = arith.constant 1.000000e+00 : f32
    %44 = vector.broadcast %cst_3 : f32 to vector<4x256xf32>
    %45 = arith.subf %44, %43 : vector<4x256xf32>
    %c16_i32_4 = arith.constant 16 : i32
    %46 = vector.broadcast %c16_i32_4 : i32 to vector<4x256xi32>
    %47 = arith.shrui %23, %46 : vector<4x256xi32>
    %48 = arith.xori %23, %47 : vector<4x256xi32>
    %c2146121005_i32_5 = arith.constant 2146121005 : i32
    %49 = vector.broadcast %c2146121005_i32_5 : i32 to vector<4x256xi32>
    %50 = arith.muli %48, %49 : vector<4x256xi32>
    %c15_i32_6 = arith.constant 15 : i32
    %51 = vector.broadcast %c15_i32_6 : i32 to vector<4x256xi32>
    %52 = arith.shrui %50, %51 : vector<4x256xi32>
    %53 = arith.xori %50, %52 : vector<4x256xi32>
    %c-2073254261_i32_7 = arith.constant -2073254261 : i32
    %54 = vector.broadcast %c-2073254261_i32_7 : i32 to vector<4x256xi32>
    %55 = arith.muli %53, %54 : vector<4x256xi32>
    %c16_i32_8 = arith.constant 16 : i32
    %56 = vector.broadcast %c16_i32_8 : i32 to vector<4x256xi32>
    %57 = arith.shrui %55, %56 : vector<4x256xi32>
    %58 = arith.xori %55, %57 : vector<4x256xi32>
    %c9_i32_9 = arith.constant 9 : i32
    %59 = vector.broadcast %c9_i32_9 : i32 to vector<4x256xi32>
    %60 = arith.shrui %58, %59 : vector<4x256xi32>
    %c1065353216_i32_10 = arith.constant 1065353216 : i32
    %61 = vector.broadcast %c1065353216_i32_10 : i32 to vector<4x256xi32>
    %62 = arith.ori %60, %61 : vector<4x256xi32>
    %63 = tpu.bitcast %62 : vector<4x256xi32> -> vector<4x256xf32>
    %cst_11 = arith.constant 1.000000e+00 : f32
    %64 = vector.broadcast %cst_11 : f32 to vector<4x256xf32>
    %65 = arith.subf %63, %64 : vector<4x256xf32>
    %66 = math.log %45 : vector<4x256xf32>
    %cst_12 = arith.constant -2.000000e+00 : f32
    %67 = vector.broadcast %cst_12 : f32 to vector<4x256xf32>
    %68 = arith.mulf %67, %66 : vector<4x256xf32>
    %69 = math.sqrt %68 : vector<4x256xf32>
    %cst_13 = arith.constant 6.28318548 : f32
    %70 = vector.broadcast %cst_13 : f32 to vector<4x256xf32>
    %71 = arith.mulf %70, %65 : vector<4x256xf32>
    %72 = math.cos %71 : vector<4x256xf32>
    %73 = arith.mulf %69, %72 : vector<4x256xf32>
    %74 = math.sin %71 : vector<4x256xf32>
    %75 = arith.mulf %69, %74 : vector<4x256xf32>
    %c0_14 = arith.constant 0 : index
    %c0_15 = arith.constant 0 : index
    %76 = vector.load %arg3[%c0_14, %c0_15] : memref<4x512xf32, #tpu.memory_space<vmem>>, vector<4x256xf32>
    %77 = vector.broadcast %0 : f32 to vector<4x256xf32>
    %78 = arith.mulf %77, %73 : vector<4x256xf32>
    %79 = arith.addf %76, %78 : vector<4x256xf32>
    %c0_16 = arith.constant 0 : index
    %c0_17 = arith.constant 0 : index
    %80 = vector.load %arg4[%c0_16, %c0_17] : memref<4x512xf32, #tpu.memory_space<vmem>>, vector<4x256xf32>
    tpu.vector_store %arg4[%c0_16, %c0_17], %79 {strides = array<i32>} : memref<4x512xf32, #tpu.memory_space<vmem>>, vector<4x256xf32>,
    %c0_18 = arith.constant 0 : index
    %c256 = arith.constant 256 : index
    %81 = vector.load %arg3[%c0_18, %c256] : memref<4x512xf32, #tpu.memory_space<vmem>>, vector<4x256xf32>
    %82 = vector.broadcast %0 : f32 to vector<4x256xf32>
    %83 = arith.mulf %82, %75 : vector<4x256xf32>
    %84 = arith.addf %81, %83 : vector<4x256xf32>
    %c0_19 = arith.constant 0 : index
    %c256_20 = arith.constant 256 : index
    %85 = vector.load %arg4[%c0_19, %c256_20] : memref<4x512xf32, #tpu.memory_space<vmem>>, vector<4x256xf32>
    tpu.vector_store %arg4[%c0_19, %c256_20], %84 {strides = array<i32>} : memref<4x512xf32, #tpu.memory_space<vmem>>, vector<4x256xf32>,
    return
  }
  func.func @transform_0(%arg0: i32) -> i32 {
    %c0_i32 = arith.constant 0 : i32
    %c0_i32_0 = arith.constant 0 : i32
    return %c0_i32 : i32
  }
  func.func @transform_1(%arg0: i32) -> i32 {
    %c0_i32 = arith.constant 0 : i32
    %c0_i32_0 = arith.constant 0 : i32
    return %c0_i32 : i32
  }
  func.func @transform_2(%arg0: i32) -> (i32, i32) {
    %c0_i32 = arith.constant 0 : i32
    %c0_i32_0 = arith.constant 0 : i32
    return %arg0, %c0_i32 : i32, i32
  }
  func.func @transform_3(%arg0: i32) -> (i32, i32) {
    %c0_i32 = arith.constant 0 : i32
    %c0_i32_0 = arith.constant 0 : i32
    return %arg0, %c0_i32 : i32, i32
  }
}

</mosaic_0001>

<bundles_post_ra>
// kernel: tpu_custom_call.1
= control target key start
LH: loop header
LB: loop body
LE: loop exit
PB: predicated region body
PF: predicated region fallthrough
CT: control target
= control target key end

     0   :  { %10 = vsyncpa [#allocation5], 0  ;;  %s1123_s0 = inlined_call_operand.<no memory space> [shape: f32[1], index: 0, kind: input, shape index: {}]   ;;  %s1124_s1 = inlined_call_operand.<no memory space> [shape: s32[1], index: 1, kind: input, shape index: {}]   ;;  %s1125_s2 = inlined_call_operand.hbm [shape: f32[4,512], index: 2, kind: input, shape index: {}]   ;;  %s1126_s3 = inlined_call_operand.hbm [shape: f32[4,512], index: 3, kind: output, shape index: {}]  }
   0x1   :  { %11 = vsyncpa [#allocation6], 0  ;;  %s21_s14 = sshll.u32 %s1125_s2, 4  ;;  %s883_s15 = smov [#allocation4]   ;;  %s22_s14 = int_to_ptr.hbm [resolvable:$true] %s21_s14 }
   0x2   :  { %s23_s16 = sshll.u32 %s883_s15, 4  ;;  %s24_s16 = int_to_ptr.vmem [resolvable:$true] %s23_s16 }
   0x3   :  { %26 = dma.hbm_to_vmem [thread:$0]  %s22_s14, 256, %s24_s16, [#allocation5]  }
   0x4   :  { %879 = dma.done.wait [#allocation5], 256  }
   0x5   :  { %880 = vsyncadd [#allocation5], 4294967040  ;;  %v32_v0 = vlaneseq  ;;  %s44_s19 = smul.u32 2654435769, %s1124_s1  ;;  %s891_s21 = smov [#allocation7]  }
   0x6   :  { %s786_s22 = sshll.u32 %s891_s21, 4  ;;  %s788_s25 = sshll.u32 %s1126_s3, 4  ;;  %s787_s22 = int_to_ptr.vmem [resolvable:$true] %s786_s22  ;;  %s789_s25 = int_to_ptr.hbm [resolvable:$true] %s788_s25 }
   0x7   :  { %v33_v1 = vshrl.u32 %v32_v0, 7  ;;  %v35_v2 = vand.u32 127, %v32_v0  ;;  %s45_s20 = sadd.s32 1013904242, %s44_s19 }
   0x8   :  { %v48_v9 = vstv %s45_s20 }
   0x9   :  { %v36_v3 = vadd.s32 128, %v35_v2  ;;  %v40_v4 = vmul.u32 256, %v33_v1  ;;  %v884_v1 = vmov 683565275  }
   0xb   :  { %v41_v5 = vadd.s32 %v40_v4, %v35_v2  ;;  %v42_v6 = vadd.s32 %v40_v4, %v36_v3  ;;  %v885_v3 = vmov 2475754826  }
   0xd   :  { %v46_v7 = vmul.u32 2, %v41_v5  ;;  %v47_v8 = vmul.u32 2, %v42_v6  ;;  %v886_v6 = vmov 2131351028  }
   0xf   :  { %v49_v10 = vadd.s32 %v48_v9, %v46_v7  ;;  %v50_v11 = vadd.s32 %v48_v9, %v47_v8  ;;  %v51_v12 = vadd.s32 1, %v46_v7  ;;  %v52_v13 = vadd.s32 1, %v47_v8 }
  0x10   :  { %v887_v8 = vmov 2102212464  }
  0x11   :  { %v53_v14 = vadd.s32 %v51_v12, %v48_v9  ;;  %v54_v15 = vadd.s32 %v52_v13, %v48_v9  ;;  %v55_v32 = vshrl.u32 %v49_v10, 16  ;;  %v56_v35 = vshrl.u32 %v50_v11, 16 }
  0x13   :  { %v81_v16 = vshrl.u32 %v53_v14, 16  ;;  %v82_v17 = vshrl.u32 %v54_v15, 16  ;;  %v57_v38 = vxor.u32 %v55_v32, %v49_v10  ;;  %v58_v40 = vxor.u32 %v56_v35, %v50_v11 }
  0x14   :  { %v888_v10 = vmov 920167782  }
  0x15   :  { %v83_v18 = vxor.u32 %v81_v16, %v53_v14  ;;  %v84_v19 = vxor.u32 %v82_v17, %v54_v15  ;;  %v59_v43 = vmul.u32 2146121005, %v57_v38  ;;  %v60_v45 = vmul.u32 2146121005, %v58_v40 }
  0x17   :  { %v85_v20 = vmul.u32 2146121005, %v83_v18  ;;  %v86_v21 = vmul.u32 2146121005, %v84_v19  ;;  %v61_v48 = vshrl.u32 %v59_v43, 15  ;;  %v62_v51 = vshrl.u32 %v60_v45, 15 }
  0x18   :  { %v889_v18 = vmov 1326507024  }
  0x19   :  { %v87_v22 = vshrl.u32 %v85_v20, 15  ;;  %v88_v23 = vshrl.u32 %v86_v21, 15  ;;  %v63_v54 = vxor.u32 %v61_v48, %v59_v43  ;;  %v64_v56 = vxor.u32 %v62_v51, %v60_v45 }
  0x1b   :  { %v89_v24 = vxor.u32 %v87_v22, %v85_v20  ;;  %v90_v25 = vxor.u32 %v88_v23, %v86_v21  ;;  %v65_v59 = vmul.u32 2221713035, %v63_v54  ;;  %v66_v62 = vmul.u32 2221713035, %v64_v56 }
  0x1d   :  { %v91_v26 = vmul.u32 2221713035, %v89_v24  ;;  %v92_v27 = vmul.u32 2221713035, %v90_v25  ;;  %v67_v12 = vshrl.u32 %v65_v59, 16  ;;  %v68_v20 = vshrl.u32 %v66_v62, 16 }
  0x1f   :  { %v93_v28 = vshrl.u32 %v91_v26, 16  ;;  %v94_v29 = vshrl.u32 %v92_v27, 16  ;;  %v965_v45 = vxor.u32 %v68_v20, %v66_v62 }
  0x21   :  { %v95_v30 = vxor.u32 %v93_v28, %v91_v26  ;;  %v96_v31 = vxor.u32 %v94_v29, %v92_v27  ;;  %v948_v29 = vxor.u32 %v67_v12, %v65_v59 }
  0x23   :  { %v97_v33 = vshrl.u32 %v95_v30, 9  ;;  %v98_v34 = vshrl.u32 %v96_v31, 9 }
  0x25   :  { %v99_v36 = vor.u32 1065353216, %v97_v33  ;;  %v100_v37 = vor.u32 1065353216, %v98_v34 }
  0x27   :  { %v800_v39 = vadd.f32 -1.0, %v99_v36  ;;  %v801_v41 = vadd.f32 -1.0, %v100_v37 }
  0x29   :  { %v918_v42 = vmul.f32 6.2831855, %v800_v39  ;;  %v921_v46 = vmul.f32 6.2831855, %v801_v41 }
  0x2b   :  { %v140_v44 = vand.u32 2139095040, %v918_v42  ;;  %v137_v49 = vand.u32 2147483647, %v918_v42  ;;  %v294_v53 = vand.u32 2139095040, %v921_v46  ;;  %v291_v28 = vand.u32 2147483647, %v921_v46 }
  0x2d   :  { %v141_v47 = vshrl.u32 %v140_v44, 23  ;;  %v144_v55 = vand.u32 8388607, %v137_v49  ;;  %v295_v57 = vshrl.u32 %v294_v53, 23  ;;  %v298_v44 = vand.u32 8388607, %v291_v28 }
  0x2f   :  { %v802_v50 = vadd.s32 4294967169, %v141_v47  ;;  %v145_v60 = vor.u32 8388608, %v144_v55  ;;  %v805_v5 = vadd.s32 4294967169, %v295_v57 }
  0x31   :  { %v147_v52 = vadd.s32 1, %v802_v50  ;;  %v936_v15 = vshll.u32 %v145_v60, 8  ;;  %v301_v23 = vadd.s32 1, %v805_v5  ;;  %v299_v60 = vor.u32 8388608, %v298_v44 }
  0x33   :  { %vm148_vm0 = vcmp.gt.s32.totalorder %v147_v52, 0  ;;  %v186_v32 = vand.u32 65535, %v936_v15  ;;  %vm302_vm5 = vcmp.gt.s32.totalorder %v301_v23, 0  ;;  %v187_v39 = vshrl.u32 %v936_v15, 16 }
  0x34   :  { %v149_v58 = vsel %vm148_vm0, %v147_v52, 0  ;;  %v303_v50 = vsel %vm302_vm5, %v301_v23, 0 }
  0x35   :  { %v151_v61 = vand.u32 31, %v149_v58  ;;  %v927_v63 = vshrl.u32 %v149_v58, 5 }
  0x37   :  { %v152_v0 = vsub.s32 32, %v151_v61  ;;  %v154_v2 = vshll.u32 %v884_v1, %v151_v61  ;;  %v157_v4 = vshll.u32 %v885_v3, %v151_v61  ;;  %v160_v7 = vshll.u32 %v886_v6, %v151_v61 }
  0x38   :  { %v163_v9 = vshll.u32 %v887_v8, %v151_v61  ;;  %v166_v11 = vshll.u32 %v888_v10, %v151_v61  ;;  %vm169_vm1 = vcmp.lt.s32.totalorder %v927_v63, 1  ;;  %vm171_vm2 = vcmp.lt.s32.totalorder %v927_v63, 3 }
  0x39   :  { %v155_v13 = vshrl.u32 %v885_v3, %v152_v0  ;;  %v158_v14 = vshrl.u32 %v886_v6, %v152_v0  ;;  %v161_v16 = vshrl.u32 %v887_v8, %v152_v0  ;;  %v164_v17 = vshrl.u32 %v888_v10, %v152_v0 }
  0x3a   :  { %v167_v19 = vshrl.u32 %v889_v18, %v152_v0  ;;  %vm170_vm3 = vcmp.lt.s32.totalorder %v927_v63, 2  ;;  %vm172_vm4 = vcmp.lt.s32.totalorder %v927_v63, 4  ;;  %v153_v33 = vshrl.u32 %v884_v1, %v152_v0 }
  0x3b   :  { %v156_v21 = vor.u32 %v155_v13, %v154_v2  ;;  %v159_v22 = vor.u32 %v158_v14, %v157_v4  ;;  %v162_v24 = vor.u32 %v161_v16, %v160_v7  ;;  %v165_v25 = vor.u32 %v164_v17, %v163_v9 }
  0x3c   :  { %v168_v26 = vor.u32 %v167_v19, %v166_v11  ;;  %v305_v61 = vand.u32 31, %v303_v50  ;;  %v975_v4 = vshrl.u32 %v303_v50, 5  ;;  %v890_v16 = vmov 0  }
  0x3d   :  { %v177_v27 = vsel %vm169_vm1, %v156_v21, %v159_v22  ;;  %v178_v30 = vsel %vm172_vm4, %v165_v25, 920167782  ;;  %v181_v31 = vsel %vm169_vm1, %v159_v22, %v162_v24  ;;  %v174_v36 = vsel %vm172_vm4, %v162_v24, 2102212464 }
  0x3e   :  { %v179_v34 = vsel %vm171_vm2, %v162_v24, %v178_v30  ;;  %v182_v35 = vsel %vm172_vm4, %v168_v26, 1326507024  ;;  %v173_v51 = vsel %vm169_vm1, %v153_v33, %v156_v21  ;;  %v175_v52 = vsel %vm171_vm2, %v159_v22, %v174_v36 }
  0x3f   :  { %v180_v37 = vsel %vm170_vm3, %v177_v27, %v179_v34  ;;  %v183_v38 = vsel %vm171_vm2, %v165_v25, %v182_v35  ;;  %v973_v62 = vsel %vm170_vm3, %v173_v51, %v175_v52  ;;  %v978_v63 = vsub.s32 32, %v305_v61 }
  0x40   :  { %v184_v40 = vsel %vm170_vm3, %v181_v31, %v183_v38  ;;  %v210_v41 = vand.u32 65535, %v180_v37  ;;  %v211_v43 = vshrl.u32 %v180_v37, 16  ;;  %v308_v22 = vshll.u32 %v884_v1, %v305_v61 }
  0x41   :  { %v188_v47 = vand.u32 65535, %v184_v40  ;;  %v189_v48 = vshrl.u32 %v184_v40, 16  ;;  %v309_v31 = vshrl.u32 %v885_v3, %v978_v63  ;;  %v311_v33 = vshll.u32 %v885_v3, %v305_v61 }
  0x42   :  { %v213_v53 = vmul.u32 %v211_v43, %v186_v32  ;;  %v214_v57 = vmul.u32 %v210_v41, %v187_v39  ;;  %v212_v58 = vmul.u32 %v210_v41, %v186_v32  ;;  %v215_v11 = vmul.u32 %v211_v43, %v187_v39 }
  0x43   :  { %v190_v54 = vmul.u32 %v188_v47, %v186_v32  ;;  %v191_v55 = vmul.u32 %v189_v48, %v186_v32  ;;  %v192_v56 = vmul.u32 %v188_v47, %v187_v39  ;;  %v193_v0 = vmul.u32 %v189_v48, %v187_v39 }
  0x44   :  { %v216_v59 = vshll.u32 %v213_v53, 16  ;;  %v217_v13 = vshrl.u32 %v213_v53, 16  ;;  %v218_v14 = vshll.u32 %v214_v57, 16  ;;  %v219_v24 = vshrl.u32 %v214_v57, 16 }
  0x45   :  { %v194_v2 = vshll.u32 %v191_v55, 16  ;;  %v195_v5 = vshrl.u32 %v191_v55, 16  ;;  %v196_v7 = vshll.u32 %v192_v56, 16  ;;  %v197_v9 = vshrl.u32 %v192_v56, 16 }
  0x46   :  { %vm220_vm7 = vc.u32 %v212_v58, %v216_v59  ;;  %v222_v19 = vadd.s32 %v216_v59, %v212_v58  ;;  %v312_v34 = vshrl.u32 %v886_v6, %v978_v63  ;;  %v314_v35 = vshll.u32 %v886_v6, %v305_v61 }
  0x47   :  { %vm198_vm6 = vc.u32 %v190_v54, %v194_v2  ;;  %v200_v12 = vadd.s32 %v194_v2, %v190_v54  ;;  %v221_v21 = vsel %vm220_vm7, 1, %v890_v16  ;;  %v992_v37 = vor.u32 %v309_v31, %v308_v22 }
  0x48   :  { %v199_v17 = vsel %vm198_vm6, 1, %v890_v16  ;;  %v223_v25 = vadd.s32 %v221_v21, %v215_v11  ;;  %vm224_vm9 = vc.u32 %v222_v19, %v218_v14  ;;  %v984_v30 = vadd.s32 %v222_v19, %v218_v14 }
  0x49   :  { %v201_v20 = vadd.s32 %v199_v17, %v193_v0  ;;  %vm202_vm8 = vc.u32 %v200_v12, %v196_v7  ;;  %v225_v27 = vsel %vm224_vm9, 1, %v890_v16  ;;  %v315_v38 = vshrl.u32 %v887_v8, %v978_v63 }
  0x4a   :  { %v203_v23 = vsel %vm202_vm8, 1, %v890_v16  ;;  %v227_v32 = vadd.s32 %v225_v27, %v223_v25  ;;  %v317_v39 = vshll.u32 %v887_v8, %v305_v61  ;;  %v997_v41 = vor.u32 %v312_v34, %v311_v33 }
  0x4b   :  { %v205_v26 = vadd.s32 %v203_v23, %v201_v20  ;;  %v318_v43 = vshrl.u32 %v888_v10, %v978_v63  ;;  %v320_v3 = vshll.u32 %v888_v10, %v305_v61  ;;  %v321_v6 = vshrl.u32 %v889_v18, %v978_v63 }
  0x4c   :  { %v228_v40 = vadd.s32 %v227_v32, %v217_v13  ;;  %vm323_vm10 = vcmp.lt.s32.totalorder %v975_v4, 1  ;;  %v1007_v47 = vshll.u32 %v299_v60, 8  ;;  %v230_v8 = vmul.u32 %v936_v15, %v973_v62 }
  0x4d   :  { %v206_v36 = vadd.s32 %v205_v26, %v195_v5  ;;  %v316_v50 = vor.u32 %v315_v38, %v314_v35  ;;  %v319_v51 = vor.u32 %v318_v43, %v317_v39  ;;  %v322_v52 = vor.u32 %v321_v6, %v320_v3 }
  0x4e   :  { %v229_v48 = vadd.s32 %v228_v40, %v219_v24  ;;  %vm325_vm12 = vcmp.lt.s32.totalorder %v975_v4, 3  ;;  %vm326_vm13 = vcmp.lt.s32.totalorder %v975_v4, 4  ;;  %vm324_vm14 = vcmp.lt.s32.totalorder %v975_v4, 2 }
  0x4f   :  { %v1002_v44 = vadd.s32 %v206_v36, %v197_v9  ;;  %v331_v18 = vsel %vm323_vm10, %v992_v37, %v997_v41  ;;  %v71_v15 = vshrl.u32 %v948_v29, 9  ;;  %v332_v53 = vsel %vm326_vm13, %v319_v51, 920167782 }
  0x50   :  { %v233_v10 = vadd.s32 1, %v229_v48  ;;  %v72_v54 = vshrl.u32 %v965_v45, 9  ;;  %v333_v56 = vsel %vm325_vm12, %v316_v50, %v332_v53  ;;  %v335_v57 = vsel %vm323_vm10, %v997_v41, %v316_v50 }
  0x51   :  { %vm232_vm11 = vc.u32 %v1002_v44, %v984_v30  ;;  %v334_v59 = vsel %vm324_vm14, %v331_v18, %v333_v56  ;;  %v336_v29 = vsel %vm326_vm13, %v322_v52, 1326507024  ;;  %v340_v60 = vand.u32 65535, %v1007_v47 }
  0x52   :  { %v234_v55 = vsel %vm232_vm11, %v233_v10, %v229_v48  ;;  %v337_v45 = vsel %vm325_vm12, %v319_v51, %v336_v29  ;;  %v341_v61 = vshrl.u32 %v1007_v47, 16  ;;  %v364_v62 = vand.u32 65535, %v334_v59 }
  0x53   :  { %v235_v58 = vadd.s32 %v234_v55, %v230_v8  ;;  %v365_v0 = vshrl.u32 %v334_v59, 16  ;;  %v73_v2 = vor.u32 1065353216, %v71_v15  ;;  %v338_v7 = vsel %vm324_vm14, %v335_v57, %v337_v45 }
  0x54   :  { %v342_v9 = vand.u32 65535, %v338_v7  ;;  %v343_v11 = vshrl.u32 %v338_v7, 16  ;;  %v74_v13 = vor.u32 1065353216, %v72_v54  ;;  %v366_v17 = vmul.u32 %v364_v62, %v340_v60 }
  0x55   :  { %v236_v5 = vadd.s32 536870912, %v235_v58  ;;  %v367_v12 = vmul.u32 %v365_v0, %v340_v60  ;;  %v368_v22 = vmul.u32 %v364_v62, %v341_v61  ;;  %v798_v23 = vadd.f32 -1.0, %v73_v2 }
  0x56   :  { %v344_v19 = vmul.u32 %v342_v9, %v340_v60  ;;  %v345_v20 = vmul.u32 %v343_v11, %v340_v60  ;;  %v346_v21 = vmul.u32 %v342_v9, %v341_v61  ;;  %v347_v26 = vmul.u32 %v343_v11, %v341_v61 }
  0x57   :  { %v1039_v14 = vshrl.u32 %v236_v5, 30  ;;  %v370_v25 = vshll.u32 %v367_v12, 16  ;;  %v369_v32 = vmul.u32 %v365_v0, %v341_v61  ;;  %v799_v33 = vadd.f32 -1.0, %v74_v13 }
  0x58   :  { %v348_v27 = vshll.u32 %v345_v20, 16  ;;  %v350_v31 = vshll.u32 %v346_v21, 16  ;;  %v307_v35 = vshrl.u32 %v884_v1, %v978_v63  ;;  %v349_v36 = vshrl.u32 %v345_v20, 16 }
  0x59   :  { %v238_v24 = vshll.u32 %v1039_v14, 30  ;;  %v372_v39 = vshll.u32 %v368_v22, 16  ;;  %vm374_vm0 = vc.u32 %v366_v17, %v370_v25  ;;  %v376_v48 = vadd.s32 %v370_v25, %v366_v17 }
  0x5a   :  { %vm352_vm15 = vc.u32 %v344_v19, %v348_v27  ;;  %v354_v38 = vadd.s32 %v348_v27, %v344_v19  ;;  %v375_v3 = vsel %vm374_vm0, 1, %v890_v16  ;;  %v79_v51 = vsub.f32 1.0, %v798_v23 }
  0x5b   :  { %v239_v34 = vsub.s32 %v235_v58, %v238_v24  ;;  %v353_v43 = vsel %vm352_vm15, 1, %v890_v16  ;;  %v377_v8 = vadd.s32 %v375_v3, %v369_v32  ;;  %v328_v1 = vsel %vm326_vm13, %v316_v50, 2102212464 }
  0x5c   :  { %v355_v6 = vadd.s32 %v353_v43, %v347_v26  ;;  %vm356_vm2 = vc.u32 %v354_v38, %v350_v31  ;;  %v351_v18 = vshrl.u32 %v346_v21, 16  ;;  %vm378_vm3 = vc.u32 %v376_v48, %v372_v39 }
  0x5d   :  { %vm240_vm1 = vcmp.lt.s32.totalorder %v239_v34, 0  ;;  %v241_v40 = vsub.s32 0, %v239_v34  ;;  %v357_v63 = vsel %vm356_vm2, 1, %v890_v16  ;;  %v327_v53 = vsel %vm323_vm10, %v307_v35, %v992_v37 }
  0x5e   :  { %v359_v15 = vadd.s32 %v357_v63, %v355_v6  ;;  %v371_v54 = vshrl.u32 %v367_v12, 16  ;;  %v379_v55 = vsel %vm378_vm3, 1, %v890_v16  ;;  %v329_v57 = vsel %vm325_vm12, %v997_v41, %v328_v1 }
  0x5f   :  { %v242_v52 = vsel %vm240_vm1, %v241_v40, %v239_v34  ;;  %v381_v50 = vadd.s32 %v379_v55, %v377_v8  ;;  %v80_v59 = vsub.f32 1.0, %v799_v33  ;;  %823 = vlog2.f32 %v79_v51 }
  0x60   :  { %v243_v10 = vclz %v242_v52  ;;  %v360_v58 = vadd.s32 %v359_v15, %v349_v36  ;;  %v373_v29 = vshrl.u32 %v368_v22, 16  ;;  %v231_v60 = vadd.s32 %v984_v30, %v1002_v44 }
  0x61   :  { %v380_v61 = vadd.s32 %v376_v48, %v372_v39  ;;  %v330_v16 = vsel %vm324_vm14, %v327_v53, %v329_v57  ;;  %v382_v62 = vadd.s32 %v381_v50, %v371_v54  ;;  %825 = vlog2.f32 %v80_v59 }
  0x62   :  { %v803_v56 = vadd.s32 4294967294, %v243_v10  ;;  %v361_v45 = vadd.s32 %v360_v58, %v351_v18  ;;  %v384_v11 = vmul.u32 %v1007_v47, %v330_v16  ;;  %vm139_vm6 = vcmp.lt.s32.totalorder %v918_v42, 0 }
  0x63   :  { %v383_v41 = vadd.s32 %v382_v62, %v373_v29  ;;  %vm1068_vm7 = vcmp.le.f32.partialorder %v137_v49, 0.7853982  ;;  %vm293_vm10 = vcmp.lt.s32.totalorder %v921_v46, 0  ;;  %vm292_vm11 = vcmp.le.f32.partialorder %v291_v28, 0.7853982 }
  0x64   :  { %vm804_vm4 = vcmp.lt.s32.totalorder %v803_v56, 0  ;;  %vm386_vm5 = vc.u32 %v361_v45, %v380_v61  ;;  %v385_v52 = vadd.s32 %v380_v61, %v361_v45 }
  0x65   :  { %v246_v37 = vsel %vm804_vm4, 0, %v803_v56  ;;  %v824_v12 = vpop.eup %823  ;;  %v387_v30 = vadd.s32 1, %v383_v41 }
  0x66   :  { %v247_v0 = vsub.s32 32, %v246_v37  ;;  %v248_v2 = vshll.u32 %v239_v34, %v246_v37  ;;  %v251_v5 = vsub.s32 4294967266, %v246_v37  ;;  %v106_v22 = vmul.f32 0.6931472, %v824_v12 }
  0x67   :  { %v388_v17 = vsel %vm386_vm5, %v387_v30, %v383_v41  ;;  %v826_v21 = vpop.eup %825 }
  0x68   :  { %v249_v7 = vshrl.u32 %v231_v60, %v247_v0  ;;  %v252_v9 = vadd.s32 127, %v251_v5  ;;  %v389_v4 = vadd.s32 %v388_v17, %v384_v11  ;;  %v108_v25 = vmul.f32 0.6931472, %v826_v21 }
  0x69   :  { %v1063_v31 = vmul.f32 -2.0, %v106_v22  ;;  %v261_v60 = vsub.s32 4, %v1039_v14 }
  0x6a   :  { %v250_v44 = vor.u32 %v249_v7, %v248_v2  ;;  %v253_v13 = vshll.u32 %v252_v9, 23  ;;  %v390_v24 = vadd.s32 536870912, %v389_v4  ;;  %v1073_v34 = vmul.f32 -2.0, %v108_v25 }
  0x6b   :  { %827 = vrsqrt.f32 %v1063_v31  ;;  %v262_v5 = vsel %vm139_vm6, %v261_v60, %v1039_v14  ;;  %vm118_vm12 = vcmp.eq.f32.partialorder %v1063_v31, inf  ;;  %vm120_vm13 = vcmp.eq.f32.partialorder %v1063_v31, 0.0 }
  0x6c   :  { %v254_v19 = vor.u32 4788187, %v253_v13  ;;  %v257_v20 = vcvt.s32.f32 %v250_v44  ;;  %v1061_v27 = vshrl.u32 %v390_v24, 30  ;;  %829 = vrsqrt.f32 %v1073_v34 }
  0x6d   :  { %v264_v44 = vsel %vm1068_vm7, 0, %v262_v5  ;;  %vm130_vm4 = vcmp.eq.f32.partialorder %v1073_v34, inf  ;;  %vm132_vm5 = vcmp.eq.f32.partialorder %v1073_v34, 0.0 }
  0x6e   :  { %v255_v23 = vand.u32 2147483647, %v254_v19  ;;  %v392_v33 = vshll.u32 %v1061_v27, 30  ;;  %v415_v30 = vsub.s32 4, %v1061_v27 }
  0x70   :  { %v258_v26 = vmul.f32 %v257_v20, %v255_v23  ;;  %v393_v36 = vsub.s32 %v389_v4, %v392_v33  ;;  %v416_v21 = vsel %vm293_vm10, %v415_v30, %v1061_v27  ;;  %v591_v23 = vadd.s32 3, %v264_v44 }
  0x71   :  { %v828_v6 = vpop.eup %827  ;;  %v418_v47 = vsel %vm292_vm11, 0, %v416_v21 }
  0x72   :  { %v259_v32 = vxor.u32 2147483648, %v258_v26  ;;  %vm394_vm8 = vcmp.lt.s32.totalorder %v393_v36, 0  ;;  %v395_v49 = vsub.s32 0, %v393_v36  ;;  %v830_v1 = vpop.eup %829  ;;  %v112_v63 = vmul.f32 %v828_v6, %v1063_v31 }
  0x73   :  { %v124_v56 = vmul.f32 %v830_v1, %v1073_v34 }
  0x74   :  { %v260_v35 = vsel %vm139_vm6, %v259_v32, %v258_v26  ;;  %v396_v43 = vsel %vm394_vm8, %v395_v49, %v393_v36  ;;  %v113_v50 = vmul.f32 %v828_v6, %v112_v63  ;;  %v281_v32 = vand.u32 3, %v264_v44 }
  0x75   :  { %v263_v38 = vsel %vm1068_vm7, %v918_v42, %v260_v35  ;;  %v397_v3 = vclz %v396_v43  ;;  %v125_v37 = vmul.f32 %v830_v1, %v124_v56  ;;  %v435_v63 = vand.u32 3, %v418_v47 }
  0x76   :  { %v265_v39 = vmul.f32 %v263_v38, %v263_v38  ;;  %v114_v0 = vmul.f32 0.5, %v113_v50  ;;  %vm283_vm14 = vcmp.eq.s32.totalorder %v281_v32, 0  ;;  %vm286_vm15 = vcmp.eq.s32.totalorder %v281_v32, 2 }
  0x77   :  { %v806_v48 = vadd.s32 4294967294, %v397_v3  ;;  %v126_v9 = vmul.f32 0.5, %v125_v37  ;;  %vm282_vm2 = vcmp.lt.s32.totalorder %v281_v32, 2  ;;  %vm280_vm6 = vweird.f32 %v918_v42 }
  0x78   :  { %v273_v40 = vmul.f32 -0.00019511016, %v265_v39  ;;  %v266_v8 = vmul.f32 -0.001358992, %v265_v39  ;;  %v115_v12 = vsub.f32 1.5, %v114_v0  ;;  %vm440_vm7 = vcmp.eq.s32.totalorder %v435_v63, 2 }
  0x79   :  { %vm807_vm9 = vcmp.lt.s32.totalorder %v806_v48, 0  ;;  %v127_v20 = vsub.f32 1.5, %v126_v9 }
  0x7a   :  { %v274_v51 = vadd.f32 0.008332121, %v273_v40  ;;  %v400_v10 = vsel %vm807_vm9, 0, %v806_v48  ;;  %v267_v54 = vadd.f32 0.041655596, %v266_v8  ;;  %v116_v4 = vmul.f32 %v828_v6, %v115_v12 }
  0x7b   :  { %v401_v18 = vsub.s32 32, %v400_v10  ;;  %v402_v15 = vshll.u32 %v393_v36, %v400_v10  ;;  %v405_v53 = vsub.s32 4294967266, %v400_v10  ;;  %v128_v36 = vmul.f32 %v830_v1, %v127_v20 }
  0x7c   :  { %v275_v55 = vmul.f32 %v274_v51, %v265_v39  ;;  %v268_v45 = vmul.f32 %v267_v54, %v265_v39  ;;  %v117_v28 = vmul.f32 %v116_v4, %v1063_v31  ;;  %v121_v40 = vand.u32 2147483648, %v1063_v31 }
  0x7d   :  { %v403_v57 = vshrl.u32 %v385_v52, %v401_v18  ;;  %v406_v58 = vadd.s32 127, %v405_v53  ;;  %v746_v6 = vadd.s32 3, %v418_v47  ;;  %v129_v51 = vmul.f32 %v128_v36, %v1073_v34 }
  0x7e   :  { %v276_v61 = vadd.f32 -0.16666654, %v275_v55  ;;  %v269_v41 = vadd.f32 -0.4999988, %v268_v45  ;;  %v119_v8 = vsel %vm118_vm12, %v1063_v31, %v117_v28  ;;  %vm436_vm9 = vcmp.lt.s32.totalorder %v435_v63, 2 }
  0x7f   :  { %v404_v59 = vor.u32 %v403_v57, %v402_v15  ;;  %v407_v29 = vshll.u32 %v406_v58, 23  ;;  %v747_v15 = vand.u32 3, %v746_v6  ;;  %v133_v57 = vand.u32 2147483648, %v1073_v34 }
  0x80   :  { %v277_v7 = vmul.f32 %v276_v61, %v265_v39  ;;  %v270_v17 = vmul.f32 %v269_v41, %v265_v39  ;;  %v592_v39 = vand.u32 3, %v591_v23  ;;  %v131_v45 = vsel %vm130_vm4, %v1073_v34, %v129_v51  ;;  %v759_v34 = vld [vmem:[#allocation4] sm:$0xff] }
  0x81   :  { %v408_v16 = vor.u32 4788187, %v407_v29  ;;  %v411_v62 = vcvt.s32.f32 %v404_v59  ;;  %v122_v29 = vsel %vm120_vm13, %v121_v40, %v119_v8  ;;  %vm752_vm8 = vcmp.eq.s32.totalorder %v747_v15, 2 }
  0x82   :  { %v278_v19 = vadd.f32 1.0, %v277_v7  ;;  %v271_v25 = vadd.f32 1.0, %v270_v17  ;;  %vm594_vm0 = vcmp.eq.s32.totalorder %v592_v39, 0  ;;  %vm597_vm1 = vcmp.eq.s32.totalorder %v592_v39, 2 }
  0x83   :  { %v409_v2 = vand.u32 2147483647, %v408_v16  ;;  %vm593_vm3 = vcmp.lt.s32.totalorder %v592_v39, 2  ;;  %vm749_vm12 = vcmp.eq.s32.totalorder %v747_v15, 0  ;;  %vm434_vm13 = vweird.f32 %v921_v46 }
  0x84   :  { %v279_v26 = vmul.f32 %v278_v19, %v263_v38  ;;  %v287_v3 = vxor.u32 2147483648, %v271_v25  ;;  %v134_v5 = vsel %vm132_vm5, %v133_v57, %v131_v45  ;;  %v760_v17 = vstv %s1123_s0 }
  0x85   :  { %v412_v11 = vmul.f32 %v411_v62, %v409_v2 }
  0x86   :  { %v284_v43 = vxor.u32 2147483648, %v279_v26  ;;  %v288_v18 = vsel %vm286_vm15, %v287_v3, %v279_v26  ;;  %v599_v56 = vsel %vm597_vm1, %v287_v3, %v279_v26 }
  0x87   :  { %v413_v13 = vxor.u32 2147483648, %v412_v11 }
  0x88   :  { %v285_v10 = vsel %vm283_vm14, %v271_v25, %v284_v43  ;;  %v596_v55 = vsel %vm594_vm0, %v271_v25, %v284_v43  ;;  %vm766_vm14 = vcmask 1043456  }
  0x89   :  { %v414_v14 = vsel %vm293_vm10, %v413_v13, %v412_v11  ;;  %v289_v58 = vsel %vm282_vm2, %v285_v10, %v288_v18  ;;  %v600_v60 = vsel %vm593_vm3, %v596_v55, %v599_v56  ;;  %vm437_vm10 = vcmp.eq.s32.totalorder %v435_v63, 0 }
  0x8a   :  { %v417_v22 = vsel %vm292_vm11, %v921_v46, %v414_v14  ;;  %v290_v16 = vsel %vm280_vm6, nan, %v289_v58  ;;  %vm748_vm11 = vcmp.lt.s32.totalorder %v747_v15, 2  ;;  %v601_v31 = vsel %vm280_vm6, nan, %v600_v60 }
  0x8b   :  { %v419_v24 = vmul.f32 %v417_v22, %v417_v22  ;;  %v445_v11 = vmul.f32 %v290_v16, %v122_v29  ;;  %v757_v30 = vmul.f32 %v601_v31, %v122_v29 }
  0x8d   :  { %v420_v33 = vmul.f32 -0.001358992, %v419_v24  ;;  %v427_v35 = vmul.f32 -0.00019511016, %v419_v24  ;;  %v761_v20 = vmul.f32 %v760_v17, %v445_v11  ;;  %v772_v46 = vmul.f32 %v760_v17, %v757_v30 }
  0x8f   :  { %v421_v49 = vadd.f32 0.041655596, %v420_v33  ;;  %v428_v27 = vadd.f32 0.008332121, %v427_v35 }
  0x91   :  { %v422_v38 = vmul.f32 %v421_v49, %v419_v24  ;;  %v429_v48 = vmul.f32 %v428_v27, %v419_v24 }
  0x93   :  { %v423_v52 = vadd.f32 -0.4999988, %v422_v38  ;;  %v430_v1 = vadd.f32 -0.16666654, %v429_v48 }
  0x95   :  { %v424_v53 = vmul.f32 %v423_v52, %v419_v24  ;;  %v431_v54 = vmul.f32 %v430_v1, %v419_v24 }
  0x97   :  { %v425_v50 = vadd.f32 1.0, %v424_v53  ;;  %v432_v59 = vadd.f32 1.0, %v431_v54 }
  0x99   :  { %v433_v61 = vmul.f32 %v432_v59, %v417_v22  ;;  %v441_v37 = vxor.u32 2147483648, %v425_v50  ;;  %v771_v22 = vld [vmem:[#allocation4 + $0x8] sm:$0xff] }
  0x9b   :  { %v438_v62 = vxor.u32 2147483648, %v433_v61  ;;  %v442_v0 = vsel %vm440_vm7, %v441_v37, %v433_v61  ;;  %v754_v2 = vsel %vm752_vm8, %v441_v37, %v433_v61 }
  0x9d   :  { %v439_v41 = vsel %vm437_vm10, %v425_v50, %v438_v62  ;;  %v751_v7 = vsel %vm749_vm12, %v425_v50, %v438_v62 }
  0x9e   :  { %v443_v9 = vsel %vm436_vm9, %v439_v41, %v442_v0  ;;  %v755_v12 = vsel %vm748_vm11, %v751_v7, %v754_v2 }
  0x9f   :  { %v444_v44 = vsel %vm434_vm13, nan, %v443_v9  ;;  %v756_v13 = vsel %vm434_vm13, nan, %v755_v12 }
  0xa0   :  { %v446_v42 = vmul.f32 %v444_v44, %v134_v5  ;;  %v758_v19 = vmul.f32 %v756_v13, %v134_v5 }
  0xa2   :  { %v762_v14 = vmul.f32 %v760_v17, %v446_v42  ;;  %v773_v4 = vmul.f32 %v760_v17, %v758_v19 }
  0xa4   :  { %v765_v21 = vrot.slane %v762_v14, 4  ;;  %v776_v23 = vrot.slane %v773_v4, 4 }
  0xa6   :  { %v767_v24 = vsel %vm766_vm14, %v761_v20, %v765_v21  ;;  %v777_v25 = vsel %vm766_vm14, %v772_v46, %v776_v23 }
  0xa7   :  { %v769_v26 = vadd.f32 %v767_v24, %v759_v34  ;;  %v779_v32 = vadd.f32 %v777_v25, %v771_v22 }
  0xa9   :  { %770 = vst [vmem:[#allocation7] sm:$0xff] %v769_v26 }
  0xaa   :  { %780 = vst [vmem:[#allocation7 + $0x8] sm:$0xff] %v779_v32 }
  0xab   :  { %791 = dma.vmem_to_hbm [thread:$0]  %s787_s22, 256, %s789_s25, [#allocation6]  }
  0xac   :  { %881 = dma.done.wait [#allocation6], 256  }
  0xad   :  { %882 = vsyncadd [#allocation6], 4294967040 }
  0xae   :  { %796 = vsyncpa [#allocation5], 1 }
  0xaf   :  { %797 = vsyncpa [#allocation6], 1 }

</bundles_post_ra>
